<compile_context>
chip_gen: v6e
topology: v6e:2x2x1
jax: 0.10.0
libtpu: 0.0.40
codegen_flags: <defaults>
</compile_context>

<pallas_src>
import functools
import math

import jax
import jax.numpy as jnp
from jax.experimental import pallas as pl
from jax.experimental.pallas import tpu as pltpu


def _round_up(x, m):
    return ((x + m - 1) // m) * m


# 48 MiB fits every generation's physical VMEM (v7x: 64 MiB / TC, v5e/v6e:
# 128 MiB) while leaving headroom; the demo shapes use well under 1 MiB.
_VMEM_LIMIT = 48 * 1024 * 1024


# ----------------------------------------------------------------------------
# Fused Conv1d kernel: im2col folded into the kernel as K shifted dots
# ----------------------------------------------------------------------------
def _conv_tap_kernel(x_ref, w_ref, b_ref, o_ref, *, ksize, stride,
                     c_in_p, c_out_p, l_out_p, relu):
    """One batch element of a 1-D conv: out = act(sum_k W_k @ x_tap_k + b).

    x_ref: (1, stride*c_in_p, L_ph)  phase-major input (phase r occupies rows
                                     [r*c_in_p, (r+1)*c_in_p)); tap k is the
                                     contiguous slice [k//stride : ... + L_out]
                                     of phase k % stride.
    w_ref: (ksize*c_out_p, c_in_p)   tap-major weights
    b_ref: (c_out_p, 1)
    o_ref: (1, c_out_p, l_out_p)     lane-dense output
    """
    x_all = x_ref[0].astype(jnp.bfloat16)          # cast in-kernel (MXU feed)
    w_all = w_ref[...].astype(jnp.bfloat16)
    acc = jnp.zeros((c_out_p, l_out_p), jnp.float32)
    for k in range(ksize):                          # fused "im2col"
        r, q = k % stride, k // stride
        xk = x_all[r * c_in_p:(r + 1) * c_in_p, q:q + l_out_p]
        wk = w_all[k * c_out_p:(k + 1) * c_out_p, :]
        acc = acc + jnp.dot(wk, xk, preferred_element_type=jnp.float32)
    out = acc + b_ref[...]                          # (C,1) broadcast
    if relu:
        out = jnp.maximum(out, 0.0)
    o_ref[0] = out.astype(o_ref.dtype)


def fused_conv1d(x, w, b, *, stride, padding, relu, out_dtype):
    """x: [B, C_in, L]; w: [C_out, C_in, K] (PyTorch layout); b: [C_out]|None.
    Returns [B, C_out, L_out] in out_dtype.  The only XLA work is one cheap
    pad + phase reshape of the input (same total size as x)."""
    B, C_in, L = x.shape
    C_out, _, K = w.shape
    L_out = (L + 2 * padding - K) // stride + 1
    Kq = -(-K // stride)                            # taps per phase (ceil)

    C_in_p = _round_up(C_in, 8)
    C_out_p = _round_up(C_out, 8)
    L_out_p = _round_up(L_out, 128)                 # lane-dense output
    L_ph = _round_up(L_out_p + Kq, 128)

    # Split the padded input into `stride` phases so that every conv tap is a
    # contiguous slice inside the kernel (no strided / gathered loads).
    right = stride * L_ph - L - padding             # >= `padding`, zero fill
    xp = jnp.pad(x, ((0, 0), (0, C_in_p - C_in), (padding, right)))
    xph = xp.reshape(B, C_in_p, L_ph, stride).transpose(0, 3, 1, 2)
    xph = xph.reshape(B, stride * C_in_p, L_ph)

    wk = jnp.pad(w.transpose(2, 0, 1),
                 ((0, 0), (0, C_out_p - C_out), (0, C_in_p - C_in)))
    wk = wk.reshape(K * C_out_p, C_in_p).astype(jnp.bfloat16)
    if b is None:
        b = jnp.zeros((C_out,), jnp.float32)
    b2 = jnp.pad(b.astype(jnp.float32), (0, C_out_p - C_out)).reshape(C_out_p, 1)

    kernel = functools.partial(_conv_tap_kernel, ksize=K, stride=stride,
                               c_in_p=C_in_p, c_out_p=C_out_p,
                               l_out_p=L_out_p, relu=relu)
    out = pl.pallas_call(
        kernel,
        grid=(B,),
        in_specs=[
            pl.BlockSpec((1, stride * C_in_p, L_ph), lambda i: (i, 0, 0)),
            pl.BlockSpec((K * C_out_p, C_in_p), lambda i: (0, 0)),   # resident
            pl.BlockSpec((C_out_p, 1), lambda i: (0, 0)),            # resident
        ],
        out_specs=pl.BlockSpec((1, C_out_p, L_out_p), lambda i: (i, 0, 0)),
        out_shape=jax.ShapeDtypeStruct((B, C_out_p, L_out_p), out_dtype),
        compiler_params=pltpu.CompilerParams(
            dimension_semantics=("parallel",),      # batch across v7x cores
            vmem_limit_bytes=_VMEM_LIMIT),
    )(xph, wk, b2)
    return out[:, :C_out, :L_out]


# ----------------------------------------------------------------------------
# ConvTranspose1d as a phase-decomposed stride-1 conv (no overlap-add)
# ----------------------------------------------------------------------------
def conv_transpose1d(x, w, b, *, stride, padding, relu, out_dtype):
    """PyTorch ConvTranspose1d.  Output phase r = t % stride is an independent
    stride-1 correlation of x with the taps k == r (mod stride), so the
    overlap-add disappears entirely and the fused conv kernel is reused.
    x: [B, C_in, L_in]; w: [C_in, C_out, K] (PyTorch layout); b: [C_out]."""
    B, C_in, L_in = x.shape
    _, C_out, K = w.shape
    Kq = -(-K // stride)
    L_full = (L_in - 1) * stride + K
    L_out = L_full - 2 * padding

    # W_eff[r*C_out + co, ci, q'] = W[ci, co, stride*(Kq-1-q') + r]  (0 if OOB)
    w_eff = jnp.zeros((stride, C_out, C_in, Kq), w.dtype)
    for r in range(stride):
        for qp in range(Kq):
            k = stride * (Kq - 1 - qp) + r
            if k < K:
                w_eff = w_eff.at[r, :, :, qp].set(w[:, :, k].T)
    w_eff = w_eff.reshape(stride * C_out, C_in, Kq)
    b_eff = jnp.tile(b, stride)                      # bias per (phase, channel)

    y = fused_conv1d(x, w_eff, b_eff, stride=1, padding=Kq - 1, relu=relu,
                     out_dtype=out_dtype)            # [B, stride*C_out, M]
    M = y.shape[-1]                                  # = L_in + Kq - 1
    y = y.reshape(B, stride, C_out, M).transpose(0, 2, 3, 1)
    y = y.reshape(B, C_out, M * stride)              # interleave phases
    return y[:, :, padding:padding + L_out]


def center_trim(t, ref_len):
    delta = t.shape[-1] - ref_len
    if delta == 0:
        return t
    return t[..., delta // 2: delta // 2 + ref_len]


# ----------------------------------------------------------------------------
# LSTM: x@W_ih fused into the recurrence kernel, time-gridded, VMEM carries
# ----------------------------------------------------------------------------
def _lstm_kernel(x_ref, wih_ref, whh_ref, b_ref, h_ref, h_scr, c_scr, *,
                 hp, cp, unroll, bc):
    """One grid step = `unroll` timesteps of one batch chunk.
    x_ref: (unroll, bc, cp) bf16 ; wih_ref: (cp, 4*hp) bf16 ;
    whh_ref: (hp, 4*hp) bf16 ; b_ref: (1, 4*hp) f32 ;
    h_ref: (unroll, bc, hp) out ; h_scr/c_scr: (bc, hp) f32 carries."""
    @pl.when(pl.program_id(1) == 0)                  # new batch chunk -> reset
    def _():
        h_scr[...] = jnp.zeros_like(h_scr)
        c_scr[...] = jnp.zeros_like(c_scr)

    # x @ W_ih^T + (b_ih + b_hh) for all `unroll` steps in one MXU call; the
    # gate pre-activations never leave VMEM.
    xg = jnp.dot(x_ref[...].reshape(unroll * bc, cp), wih_ref[...],
                 preferred_element_type=jnp.float32) + b_ref[...]

    for u in range(unroll):                          # static time unroll
        g = xg[u * bc:(u + 1) * bc, :] + jnp.dot(
            h_scr[...].astype(jnp.bfloat16), whh_ref[...],
            preferred_element_type=jnp.float32)
        # Gate slices are 128-lane aligned (hp is a multiple of 128).
        i_g = jax.nn.sigmoid(g[:, 0 * hp:1 * hp])    # PyTorch order: i,f,g,o
        f_g = jax.nn.sigmoid(g[:, 1 * hp:2 * hp])
        g_g = jnp.tanh(g[:, 2 * hp:3 * hp])
        o_g = jax.nn.sigmoid(g[:, 3 * hp:4 * hp])
        c_new = f_g * c_scr[...] + i_g * g_g
        h_new = o_g * jnp.tanh(c_new)
        c_scr[...] = c_new
        h_scr[...] = h_new
        h_ref[u] = h_new.astype(h_ref.dtype)


def _prep_lstm_weights(w_ih, w_hh, b_ih, b_hh, H, Hp, C, Cp):
    """Pad each gate block to a 128-lane boundary (padded units stay exactly 0:
    i=f=o=0.5, g=0 -> c=h=0) and pre-cast the MXU operands to bf16."""
    wi = w_ih.reshape(4, H, C).transpose(2, 0, 1)                  # [C, 4, H]
    wi = jnp.pad(wi, ((0, Cp - C), (0, 0), (0, Hp - H))).reshape(Cp, 4 * Hp)
    wh = w_hh.reshape(4, H, H).transpose(2, 0, 1)                  # [H, 4, H]
    wh = jnp.pad(wh, ((0, Hp - H), (0, 0), (0, Hp - H))).reshape(Hp, 4 * Hp)
    bb = jnp.pad((b_ih + b_hh).reshape(4, H), ((0, 0), (0, Hp - H)))
    return (wi.astype(jnp.bfloat16), wh.astype(jnp.bfloat16),
            bb.reshape(1, 4 * Hp).astype(jnp.float32))


def _lstm_layer(x, wi, wh, b2, Hp, *, unroll):
    Tp, Bp, Cp = x.shape
    NB = 2 if Bp % 16 == 0 else 1        # 2 batch chunks -> both v7x cores
    BC = Bp // NB
    NT = Tp // unroll
    kernel = functools.partial(_lstm_kernel, hp=Hp, cp=Cp, unroll=unroll, bc=BC)
    return pl.pallas_call(
        kernel,
        grid=(NB, NT),
        in_specs=[
            pl.BlockSpec((unroll, BC, Cp), lambda nb, t: (t, nb, 0)),
            # Resident weights (constant index map -> fetched once, bf16).
            # TODO(synk): pipeline_mode=pl.Buffered(1) here would also drop the
            # unused second weight buffer for very large H on v7x.
            pl.BlockSpec((Cp, 4 * Hp), lambda nb, t: (0, 0)),
            pl.BlockSpec((Hp, 4 * Hp), lambda nb, t: (0, 0)),
            pl.BlockSpec((1, 4 * Hp), lambda nb, t: (0, 0)),
        ],
        out_specs=pl.BlockSpec((unroll, BC, Hp), lambda nb, t: (t, nb, 0)),
        out_shape=jax.ShapeDtypeStruct((Tp, Bp, Hp), jnp.bfloat16),
        scratch_shapes=[pltpu.VMEM((BC, Hp), jnp.float32),   # h carry
                        pltpu.VMEM((BC, Hp), jnp.float32)],  # c carry
        compiler_params=pltpu.CompilerParams(
            dimension_semantics=("parallel", "arbitrary"),
            vmem_limit_bytes=_VMEM_LIMIT),
    )(x, wi, wh, b2)


def lstm_stack(x_tbc, lstm_params, hidden, *, unroll=8):
    """Multi-layer LSTM with h0 = c0 = 0.  x_tbc: [T, B, C] -> [T, B, hidden]
    (bf16).  Padded timesteps (Tp > T) compute throwaway state after the last
    real step; outputs are sliced back to T and carries are never reused."""
    T, B, C = x_tbc.shape
    U = max(1, min(unroll, T))
    Tp = _round_up(T, U)
    Bp = _round_up(max(B, 8), 8)
    Hp = _round_up(hidden, 128)
    Cp = _round_up(C, 8)
    x = jnp.pad(x_tbc, ((0, Tp - T), (0, Bp - B), (0, Cp - C)))
    x = x.astype(jnp.bfloat16)
    for (w_ih, w_hh, b_ih, b_hh) in lstm_params:
        wi, wh, b2 = _prep_lstm_weights(w_ih, w_hh, b_ih, b_hh, hidden, Hp, C, Cp)
        x = _lstm_layer(x, wi, wh, b2, Hp, unroll=U)
        C, Cp = hidden, Hp
    return x[:T, :B, :hidden]


# ----------------------------------------------------------------------------
# MegPredictor parameters & forward
# ----------------------------------------------------------------------------
def init_params(key, *, meg_dim, forcing_dims, n_subjects, subject_dim,
                conv_layers, kernel, conv_channels, lstm_hidden, lstm_layers):
    keys = iter(jax.random.split(key, 128))

    def u(shape, fan_in):
        bound = 1.0 / math.sqrt(fan_in)
        return jax.random.uniform(next(keys), shape, jnp.float32, -bound, bound)

    params = {}
    in_ch = meg_dim + 1 + subject_dim + sum(forcing_dims.values())
    if subject_dim:
        params["embedding"] = jax.random.normal(
            next(keys), (n_subjects, subject_dim), jnp.float32)

    enc = []
    c = in_ch
    for _ in range(conv_layers):
        enc.append((u((conv_channels, c, kernel), c * kernel),
                    u((conv_channels,), c * kernel)))
        c = conv_channels
    params["encoder"] = enc

    lstm = []
    if lstm_layers:
        inp = c
        for _ in range(lstm_layers):
            lstm.append((u((4 * lstm_hidden, inp), lstm_hidden),          # W_ih
                         u((4 * lstm_hidden, lstm_hidden), lstm_hidden),  # W_hh
                         u((4 * lstm_hidden,), lstm_hidden),              # b_ih
                         u((4 * lstm_hidden,), lstm_hidden)))             # b_hh
            inp = lstm_hidden
        c = lstm_hidden
    params["lstm"] = lstm

    # TODO(synk): conv_layers == 0 uses a 1x1 Conv1d decoder in the reference
    # module; only the conv_layers >= 1 (ConvTranspose) decoder is built here.
    dec = []
    channels = conv_channels
    for index in range(conv_layers):
        if index == conv_layers - 1:
            channels = meg_dim
        dec.append((u((c, channels, kernel), c * kernel),
                    u((channels,), c * kernel)))
        c = channels
    params["decoder"] = dec
    return params


def meg_predictor_forward(params, meg, forcings, subject_id, *, meg_init,
                          forcing_dims, conv_layers, kernel, stride,
                          lstm_hidden):
    batch, _, length = meg.shape

    # mask + masked meg
    mask = jnp.zeros((batch, 1, length), jnp.float32).at[:, :, :meg_init].set(1.0)
    meg = meg * mask
    inputs = [meg, mask]

    # subject embedding, broadcast over time
    if "embedding" in params:
        subject = params["embedding"][subject_id]                      # [B, S]
        inputs.append(jnp.broadcast_to(
            subject[:, :, None], (batch, subject.shape[1], length)))

    # forcings sorted by key (matches `sorted(...)` in the PyTorch forward)
    for k in sorted(forcing_dims):
        inputs.append(forcings[k])

    x = jnp.concatenate(inputs, axis=1)

    # pad to valid length
    vlen = length
    for _ in range(conv_layers):
        vlen = math.ceil(vlen / stride) + 1
    for _ in range(conv_layers):
        vlen = (vlen - 1) * stride
    delta = vlen - length
    x = jnp.pad(x, ((0, 0), (0, 0), (delta // 2, delta - delta // 2)))

    # encoder: fused Conv1d + ReLU stacks (bf16 activations between layers)
    for (w, b) in params["encoder"]:
        x = fused_conv1d(x, w, b, stride=stride, padding=kernel // 2,
                         relu=True, out_dtype=jnp.bfloat16)

    # LSTM (time-major)
    if params["lstm"]:
        # TODO(synk): this layout transpose (and the one after) could be fused
        # into the neighbouring kernels' out_specs; left in XLA (small arrays).
        x = jnp.transpose(x, (2, 0, 1))          # [T, B, C]
        x = lstm_stack(x, params["lstm"], lstm_hidden, unroll=8)
        x = jnp.transpose(x, (1, 2, 0))          # [B, H, T]

    # decoder: ConvTranspose1d (+ ReLU except on the last layer)
    n_dec = len(params["decoder"])
    for idx, (w, b) in enumerate(params["decoder"]):
        last = idx == n_dec - 1
        x = conv_transpose1d(x, w, b, stride=stride, padding=kernel // 2,
                             relu=not last,
                             out_dtype=jnp.float32 if last else jnp.bfloat16)

    return center_trim(x.astype(jnp.float32), length)


# ----------------------------------------------------------------------------
# Demo
# ----------------------------------------------------------------------------
if __name__ == "__main__":
    # small config consistent with the module
    meg_dim = 8
    forcing_dims = {"audio": 2, "visual": 3}
    meg_init = 4
    n_subjects = 10
    subject_dim = 16
    conv_layers = 2
    kernel = 4
    stride = 2
    conv_channels = 32
    lstm_hidden = 32
    lstm_layers = 2
    batch = 2
    length = 16

    key = jax.random.PRNGKey(0)
    kp, km, ka, kv, ks = jax.random.split(key, 5)

    params = init_params(kp, meg_dim=meg_dim, forcing_dims=forcing_dims,
                         n_subjects=n_subjects, subject_dim=subject_dim,
                         conv_layers=conv_layers, kernel=kernel,
                         conv_channels=conv_channels, lstm_hidden=lstm_hidden,
                         lstm_layers=lstm_layers)

    meg = jax.random.normal(km, (batch, meg_dim, length), jnp.float32)
    forcings = {
        "audio": jax.random.normal(ka, (batch, 2, length), jnp.float32),
        "visual": jax.random.normal(kv, (batch, 3, length), jnp.float32),
    }
    subject_id = jax.random.randint(ks, (batch,), 0, n_subjects)

    out = meg_predictor_forward(params, meg, forcings, subject_id,
                                meg_init=meg_init, forcing_dims=forcing_dims,
                                conv_layers=conv_layers, kernel=kernel,
                                stride=stride, lstm_hidden=lstm_hidden)
    out = jax.block_until_ready(out)
    assert out.shape == (batch, meg_dim, length), out.shape
    assert jnp.all(jnp.isfinite(out))
    print("KERNEL_OK")
</pallas_src>

<mosaic_0001>
module attributes {stable_mosaic.version = 11 : i64} {
  func.func @_conv_tap_kernel(%arg0: i32, %arg1: memref<1x64x256xf32, #tpu.memory_space<vmem>>, %arg2: memref<128x32xbf16, #tpu.memory_space<vmem>>, %arg3: memref<32x1xf32, #tpu.memory_space<vmem>>, %arg4: memref<1x32x128xbf16, #tpu.memory_space<vmem>>) attributes {dimension_semantics = [#tpu.dimension_semantics<parallel>], iteration_bounds = array<i64: 2>, scalar_prefetch = 0 : i64, scratch_operands = 0 : i64, tpu.core_type = #tpu.core_type<tc>, window_params = [{transform_indices = @transform_0, window_bounds = array<i64: 1, 64, 256>}, {pipeline_mode = #tpu.pipeline_mode<synchronous>, transform_indices = @transform_1, window_bounds = array<i64: 128, 32>}, {pipeline_mode = #tpu.pipeline_mode<synchronous>, transform_indices = @transform_2, window_bounds = array<i64: 32, 1>}, {transform_indices = @transform_3, window_bounds = array<i64: 1, 32, 128>}]} {
    %c0 = arith.constant 0 : index
    %c0_0 = arith.constant 0 : index
    %c0_1 = arith.constant 0 : index
    %0 = vector.load %arg1[%c0, %c0_0, %c0_1] : memref<1x64x256xf32, #tpu.memory_space<vmem>>, vector<1x64x256xf32>
    %1 = vector.shape_cast %0 : vector<1x64x256xf32> to vector<64x256xf32>
    %2 = arith.truncf %1 : vector<64x256xf32> to vector<64x256xbf16>
    %c0_2 = arith.constant 0 : index
    %c0_3 = arith.constant 0 : index
    %3 = vector.load %arg2[%c0_2, %c0_3] : memref<128x32xbf16, #tpu.memory_space<vmem>>, vector<128x32xbf16>
    %cst = arith.constant 0.000000e+00 : f32
    %4 = vector.broadcast %cst : f32 to vector<32x128xf32>
    %5 = vector.extract_strided_slice %2 {offsets = [0, 0], sizes = [32, 128], strides = [1, 1]} : vector<64x256xbf16> to vector<32x128xbf16>
    %6 = vector.extract_strided_slice %3 {offsets = [0, 0], sizes = [32, 32], strides = [1, 1]} : vector<128x32xbf16> to vector<32x32xbf16>
    %cst_4 = arith.constant dense<0.000000e+00> : vector<32x128xf32>
    %7 = tpu.matmul %6, %5, %cst_4 {dimension_numbers = #tpu.dot_dimension_numbers<[1], [0], [0], [1], [0, 0, 1, 1], [], []>} : vector<32x32xbf16>, vector<32x128xbf16>, vector<32x128xf32> -> vector<32x128xf32>
    %8 = arith.addf %4, %7 : vector<32x128xf32>
    %9 = vector.extract_strided_slice %2 {offsets = [32, 0], sizes = [32, 128], strides = [1, 1]} : vector<64x256xbf16> to vector<32x128xbf16>
    %10 = vector.extract_strided_slice %3 {offsets = [32, 0], sizes = [32, 32], strides = [1, 1]} : vector<128x32xbf16> to vector<32x32xbf16>
    %cst_5 = arith.constant dense<0.000000e+00> : vector<32x128xf32>
    %11 = tpu.matmul %10, %9, %cst_5 {dimension_numbers = #tpu.dot_dimension_numbers<[1], [0], [0], [1], [0, 0, 1, 1], [], []>} : vector<32x32xbf16>, vector<32x128xbf16>, vector<32x128xf32> -> vector<32x128xf32>
    %12 = arith.addf %8, %11 : vector<32x128xf32>
    %13 = vector.extract_strided_slice %2 {offsets = [0, 1], sizes = [32, 128], strides = [1, 1]} : vector<64x256xbf16> to vector<32x128xbf16>
    %14 = vector.extract_strided_slice %3 {offsets = [64, 0], sizes = [32, 32], strides = [1, 1]} : vector<128x32xbf16> to vector<32x32xbf16>
    %cst_6 = arith.constant dense<0.000000e+00> : vector<32x128xf32>
    %15 = tpu.matmul %14, %13, %cst_6 {dimension_numbers = #tpu.dot_dimension_numbers<[1], [0], [0], [1], [0, 0, 1, 1], [], []>} : vector<32x32xbf16>, vector<32x128xbf16>, vector<32x128xf32> -> vector<32x128xf32>
    %16 = arith.addf %12, %15 : vector<32x128xf32>
    %17 = vector.extract_strided_slice %2 {offsets = [32, 1], sizes = [32, 128], strides = [1, 1]} : vector<64x256xbf16> to vector<32x128xbf16>
    %18 = vector.extract_strided_slice %3 {offsets = [96, 0], sizes = [32, 32], strides = [1, 1]} : vector<128x32xbf16> to vector<32x32xbf16>
    %cst_7 = arith.constant dense<0.000000e+00> : vector<32x128xf32>
    %19 = tpu.matmul %18, %17, %cst_7 {dimension_numbers = #tpu.dot_dimension_numbers<[1], [0], [0], [1], [0, 0, 1, 1], [], []>} : vector<32x32xbf16>, vector<32x128xbf16>, vector<32x128xf32> -> vector<32x128xf32>
    %20 = arith.addf %16, %19 : vector<32x128xf32>
    %c0_8 = arith.constant 0 : index
    %c0_9 = arith.constant 0 : index
    %21 = vector.load %arg3[%c0_8, %c0_9] : memref<32x1xf32, #tpu.memory_space<vmem>>, vector<32x1xf32>
    %22 = vector.broadcast %21 : vector<32x1xf32> to vector<32x128xf32>
    %23 = arith.addf %20, %22 : vector<32x128xf32>
    %cst_10 = arith.constant 0.000000e+00 : f32
    %24 = vector.broadcast %cst_10 : f32 to vector<32x128xf32>
    %25 = arith.maximumf %23, %24 : vector<32x128xf32>
    %26 = arith.truncf %25 : vector<32x128xf32> to vector<32x128xbf16>
    %c0_11 = arith.constant 0 : index
    %c0_12 = arith.constant 0 : index
    %c0_13 = arith.constant 0 : index
    %27 = vector.load %arg4[%c0_11, %c0_12, %c0_13] : memref<1x32x128xbf16, #tpu.memory_space<vmem>>, vector<1x32x128xbf16>
    %28 = vector.shape_cast %27 : vector<1x32x128xbf16> to vector<32x128xbf16>
    %29 = vector.shape_cast %26 : vector<32x128xbf16> to vector<1x32x128xbf16>
    tpu.vector_store %arg4[%c0_11, %c0_12, %c0_13], %29 {strides = array<i32>} : memref<1x32x128xbf16, #tpu.memory_space<vmem>>, vector<1x32x128xbf16>,
    return
  }
  func.func @transform_0(%arg0: i32) -> (i32, i32, i32) {
    %c0_i32 = arith.constant 0 : i32
    %c0_i32_0 = arith.constant 0 : i32
    %c0_i32_1 = arith.constant 0 : i32
    return %arg0, %c0_i32, %c0_i32_0 : i32, i32, i32
  }
  func.func @transform_1(%arg0: i32) -> (i32, i32) {
    %c0_i32 = arith.constant 0 : i32
    %c0_i32_0 = arith.constant 0 : i32
    %c0_i32_1 = arith.constant 0 : i32
    return %c0_i32, %c0_i32_0 : i32, i32
  }
  func.func @transform_2(%arg0: i32) -> (i32, i32) {
    %c0_i32 = arith.constant 0 : i32
    %c0_i32_0 = arith.constant 0 : i32
    %c0_i32_1 = arith.constant 0 : i32
    return %c0_i32, %c0_i32_0 : i32, i32
  }
  func.func @transform_3(%arg0: i32) -> (i32, i32, i32) {
    %c0_i32 = arith.constant 0 : i32
    %c0_i32_0 = arith.constant 0 : i32
    %c0_i32_1 = arith.constant 0 : i32
    return %arg0, %c0_i32, %c0_i32_0 : i32, i32, i32
  }
}

</mosaic_0001>

<bundles_post_ra>
// kernel: tpu_custom_call.1
= control target key start
LH: loop header
LB: loop body
LE: loop exit
PB: predicated region body
PF: predicated region fallthrough
CT: control target
= control target key end

     0   :  { %8 = vsyncpa [#allocation3], 0  ;;  %s1165_s0 = inlined_call_operand.hbm [shape: f32[2,64,256], index: 0, kind: input, shape index: {}]   ;;  %s1166_s1 = inlined_call_operand.vmem [shape: bf16[128,32], index: 1, kind: input, shape index: {}]   ;;  %s1167_s2 = inlined_call_operand.vmem [shape: f32[32,1], index: 2, kind: input, shape index: {}]   ;;  %s1168_s3 = inlined_call_operand.hbm [shape: bf16[2,32,128], index: 3, kind: output, shape index: {}]  }
   0x1   :  { %10 = vsyncpa [#allocation3 + $0x1], 0 }
   0x2   :  { %11 = vsyncpa [#allocation4], 0 }
   0x3   :  { %13 = vsyncpa [#allocation4 + $0x1], 0  ;;  %s954_s12 = smov 0   ;;  %s956_s13 = smov 0  }
   0x4   :  { %s958_s14 = smov 0   ;;  %s960_s15 = smov 0  }
   0x5 LB: > { %s975_s16 = sadd.s32 4294967295, %s924_s15   ;;  %s671_s17 = sadd.s32 4294967294, %s924_s15   ;;  %s924_s15 = sphi %s960_s15, %s1183_s15   ;;  %s920_s14 = sphi %s958_s14, %s1182_s14   ;;  %s916_s13 = sphi %s956_s13, %s1181_s13   ;;  %s912_s12 = sphi %s954_s12, %s1180_s12  }
   0x6   : > { %s979_s18 = sadd.s32 1, %s924_s15   ;;  %s26_s19 = sadd.s32 1, %s920_s14 }
   0x7   : > { %s23_s20 = ssub.s32 %s924_s15, %s979_s18  ;;  %p33_p0 = scmp.ne.s32.totalorder %s920_s14, %s916_s13 }
   0x8   : > { %p24_p1 = scmp.eq.s32.totalorder %s23_s20, 0  ;;  %p34_p2 = scmp.eq.s32.totalorder %s924_s15, 0 }
   0x9   : > { %p39_p3 = scmp.ne.s32.totalorder %s916_s13, %s912_s12  ;;  %p40_p4 = scmp.eq.s32.totalorder %s975_s16, 0 }
   0xa   : > { %s991_s21 = scalar_select %p24_p1, %s920_s14, %s26_s19  }
   0xb   : > { %p993_p5 = por %p34_p2, %p33_p0  ;;  %p997_p6 = por %p40_p4, %p39_p3 }
   0xc   : > { %p105_p7 = scmp.eq.s32.totalorder %s975_s16, 1  ;;  %p111_p8 = scmp.eq.s32.totalorder %s671_s17, 1 }
   0xd   : > { %s1172_s23 = scalar_select %p997_p6, 1, 0 }
   0xe   : > { %p782_p10 = scmp.lt.s32.totalorder %s924_s15, 2  ;;  %p1004_p11 = por %p105_p7, %p33_p0 }
   0xf   : > { %p1008_p12 = por %p111_p8, %p39_p3  ;;  %s137_s26 = sand.u32 1, %s920_s14  }
  0x10   : > { %s1173_s24 = scalar_select %p1004_p11, 1, 0 }
  0x11   : > { %s1174_s25 = scalar_select %p1008_p12, 1, 0 }
  0x12   : > { %s705_s27 = sshll.u32 %s924_s15, 11  ;;  %s674_s28 = sshll.u32 %s137_s26, 7 }
  0x13   : > { %s1017_s4 = scalar_lea.hbm %s1165_s0, %s705_s27  ;;  %s141_s5 = scalar_lea.vmem [#allocation2], %s674_s28 }
  0x14   : > { %s148_s6 = sshll.u32 %s141_s5, 4  ;;  %p1021_p13 = pnand %p782_p10, %p993_p5  ;;  %s1025_s6 = int_to_ptr.vmem [resolvable:$true] %s148_s6 }
  0x15   : > { %s1027_s8 = scalar_lea.sflag [#allocation3], %s137_s26  ;;  %s832_s9 = scalar_lea.hbm %s1017_s4, 2048 }
  0x16   : > { %p833_p0 = scmp.ne.s32.totalorder %s1017_s4, %s832_s9  ;;  %p834_p1 = pneg %p1021_p13 }
  0x17   : > { %s837_s17 = scalar_lea.hbm %s1165_s0, 4096  ;;  %p838_p4 = scmp.lt.s32.totalorder %s1017_s4, %s1165_s0 }
  0x18   : > { %p835_p2 = pnand %p834_p1, %p833_p0  ;;  %p839_p5 = scmp.lt.s32.totalorder %s837_s17, %s832_s9 }
  0x1a   : > { %p836_p3 = pneg %p835_p2  ;;  %p840_p7 = por %p839_p5, %p838_p4 }
  0x1c   : > { %p841_p8 = pnand %p840_p7, %p836_p3 }
  0x1e   : > { %844 = shalt.err (!%p841_p8)
}
  0x1f   : > { %s845_s22 = scalar_lea.vmem %s1025_s6, 2048  ;;  %s926_s26 = smov [#allocation2]  }
  0x20   : > { %p846_p10 = scmp.ne.s32.totalorder %s1025_s6, %s845_s22  ;;  %s850_s27 = sshll.u32 %s926_s26, 4  ;;  %s851_s27 = int_to_ptr.vmem [resolvable:$false] %s850_s27 }
  0x21   : > { %s852_s28 = scalar_lea.vmem %s851_s27, 4096  ;;  %p853_p2 = scmp.lt.s32.totalorder %s1025_s6, %s851_s27 }
  0x22   : > { %p848_p9 = pnand %p846_p10, %p834_p1  ;;  %p854_p12 = scmp.lt.s32.totalorder %s852_s28, %s845_s22 }
  0x24   : > { %p849_p0 = pneg %p848_p9  ;;  %p855_p11 = por %p854_p12, %p853_p2 }
  0x26   : > { %p856_p6 = pnand %p855_p11, %p849_p0 }
  0x28   : > { %859 = shalt.err (!%p856_p6)
}
  0x29   : > { %s927_s29 = smov 256   ;;  %s928_s30 = smov 16  }
  0x2a   : > { %777 = dma.hbm_to_vmem [thread:$0]  (!%p1021_p13), %s1017_s4, 2048, %s1025_s6, %s1027_s8, %s927_s29, %s927_s29, %s928_s30  }
  0x2b   : > { %p677_p9 = scmp.ge.s32.totalorder %s924_s15, 1  ;;  %p156_p1 = scmp.lt.s32.totalorder %s924_s15, 3 }
  0x2d   : > { %p157_p3 = pnand %p677_p9, %p156_p1 }
  0x2e   : > { %s1051_s5 = sand.u32 (!%p157_p3), 1, %s916_s13   ;;  %p1176_p6 = scmp.ne.s32.totalorder (!%p157_p3), %s1172_s23, 0 }
  0x2f   : > { %160 = sbr.rel (%p157_p3) target bundleno = 410 (0x19a), region = 32  ;;  %s678_s9 = sshll.u32 (!%p157_p3), %s1051_s5, 7 }
  0x30   : > { %s163_s10 = scalar_lea.sflag (!%p157_p3), [#allocation3], %s1051_s5  ;;  %s166_s11 = scalar_lea.vmem (!%p157_p3), [#allocation2], %s678_s9 }
  0x34   : > { %903 = dma.done.wait (%p1176_p6), %s163_s10, 2048  }
  0x35   : > { %905 = vsyncadd (%p1176_p6), %s163_s10, 4294965248  ;;  %v202_v0 = vld [vmem:[%s166_s11 + $0x60] sm:$0xff]  ;;  %v204_v1 = vld [vmem:[%s166_s11 + $0x70] sm:$0xff]  ;;  %s929_s4 = smov 127   ;;  %vm240_vm0 = vcmask 261120   ;;  %v930_v29 = vmov 0  }
  0x36   : > { %v194_v2 = vld [vmem:[%s166_s11 + $0x20] sm:$0xff]  ;;  %v212_v3 = vpack.c.bf16 %v204_v1, %v202_v0  ;;  %v196_v4 = vld [vmem:[%s166_s11 + $0x30] sm:$0xff]  ;;  %v203_v5 = vld [vmem:[%s166_s11 + $0x68] sm:$0xff]  ;;  %822 = vset.pattern.permute.xlu0 %v930_v29  ;;  %823 = vset.pattern.permute.xlu1 %v930_v29  ;;  %vm383_vm1 = vcmask 1039360   ;;  %s679_s22 = sshll.u32 %s1051_s5, 4  ;;  %s710_s28 = sshll.u32 %s975_s16, 8 }
  0x37   : > { %v205_v6 = vld [vmem:[%s166_s11 + $0x78] sm:$0xff]  ;;  %v208_v7 = vpack.c.bf16 %v196_v4, %v194_v2  ;;  %v195_v8 = vld [vmem:[%s166_s11 + $0x28] sm:$0xff]  ;;  %v190_v11 = vld [vmem:[%s166_s11] sm:$0xff]  ;;  %s188_s26 = scalar_lea.vmem [#allocation5], %s679_s22  ;;  %s1122_s9 = scalar_lea.hbm %s1168_s3, %s710_s28 }
  0x38   : > { %v197_v9 = vld [vmem:[%s166_s11 + $0x38] sm:$0xff]  ;;  %465 = vrot.lane.b32.xlu1 %v212_v3, %s929_s4  ;;  %v213_v10 = vpack.c.bf16 %v205_v6, %v203_v5  ;;  %v192_v12 = vld [vmem:[%s166_s11 + $0x10] sm:$0xff]  ;;  %738 = vmatprep.subr.bf16.mxu0 %v212_v3  ;;  %v191_v14 = vld [vmem:[%s166_s11 + $0x8] sm:$0xff]  ;;  %s598_s27 = sshll.u32 %s188_s26, 4  ;;  %s585_s10 = scalar_lea.sflag [#allocation4], %s1051_s5  ;;  %s1117_s27 = int_to_ptr.vmem [resolvable:$true] %s598_s27 }
  0x39   : > { %379 = vrot.lane.b32.xlu0 %v208_v7, %s929_s4  ;;  %v209_v13 = vpack.c.bf16 %v197_v9, %v195_v8  ;;  %v193_v15 = vld [vmem:[%s166_s11 + $0x18] sm:$0xff]  ;;  %v206_v16 = vpack.c.bf16 %v192_v12, %v190_v11  ;;  %v198_v17 = vld [vmem:[%s166_s11 + $0x40] sm:$0xff]  ;;  %746 = vmatprep.subr.bf16.mxu1 %v208_v7  ;;  %v200_v18 = vld [vmem:[%s166_s11 + $0x50] sm:$0xff]  ;;  %p1177_p12 = scmp.ne.s32.totalorder %s1173_s24, 0  ;;  %s931_s16 = smov [#allocation5]  }
  0x3a   : > { %739 = vmatpush3.bf16.msra.mxu0 %v212_v3  ;;  %747 = vmatpush3.bf16.msra.mxu1 %v208_v7  ;;  %v199_v19 = vld [vmem:[%s166_s11 + $0x48] sm:$0xff]  ;;  %v201_v20 = vld [vmem:[%s166_s11 + $0x58] sm:$0xff]  ;;  %v210_v21 = vpack.c.bf16 %v200_v18, %v198_v17  ;;  %v824_v22 = vld [vmem:[%s1166_s1 + $0x10] sm:$0xff]   ;;  %v207_v23 = vpack.c.bf16 %v193_v15, %v191_v14  ;;  %s860_s11 = scalar_lea.vmem %s1117_s27, 256  ;;  %s864_s23 = sshll.u32 %s931_s16, 4  ;;  %s865_s23 = int_to_ptr.vmem [resolvable:$false] %s864_s23 }
  0x3b   : > { %748 = vmatprep.subr.bf16.mxu1 %v206_v16  ;;  %v825_v24 = vld [vmem:[%s1166_s1] sm:$0xff]   ;;  %v826_v25 = vld [vmem:[%s1166_s1 + $0x18] sm:$0xff]   ;;  %v827_v26 = vld [vmem:[%s1166_s1 + $0x8] sm:$0xff]   ;;  %742 = vmatprep.mubr.msk.bf16.mxu0 %vm240_vm0, %v824_v22  ;;  %v211_v28 = vpack.c.bf16 %v201_v20, %v199_v19  ;;  %p861_p11 = scmp.ne.s32.totalorder %s1117_s27, %s860_s11  ;;  %s866_s6 = scalar_lea.vmem %s865_s23, 512 }
  0x3c   : > { %467 = vrot.lane.b32.xlu1 %v213_v10, %s929_s4  ;;  %740 = vmatprep.subr.bf16.mxu0 %v210_v21  ;;  %v828_v27 = vld [vmem:[%s1166_s1 + $0x20] sm:$0xff]   ;;  %v830_v30 = vld [vmem:[%s1166_s1 + $0x30] sm:$0xff]   ;;  %v533_v31 = vld [vmem:[%s1167_s2 + $0x8] sm:$0xff]  ;;  %p867_p5 = scmp.lt.s32.totalorder %s1117_s27, %s865_s23  ;;  %p868_p7 = scmp.lt.s32.totalorder %s866_s6, %s860_s11 }
  0x3d   : > { %381 = vrot.lane.b32.xlu0 %v209_v13, %s929_s4  ;;  %750 = vmatprep.mubr.msk.bf16.mxu1 %vm240_vm0, %v825_v24  ;;  %v532_v32 = vld [vmem:[%s1167_s2] sm:$0xff]  ;;  %v534_v33 = vld [vmem:[%s1167_s2 + $0x10] sm:$0xff]  ;;  %v535_v34 = vld [vmem:[%s1167_s2 + $0x18] sm:$0xff]  ;;  %p862_p13 = pnand %p861_p11, %p1177_p12 }
  0x3e   : > { %741 = vmatpush3.bf16.msra.mxu0 %v210_v21  ;;  %749 = vmatpush3.bf16.msra.mxu1 %v206_v16  ;;  %v829_v44 = vld [vmem:[%s1166_s1 + $0x28] sm:$0xff]   ;;  %v831_v48 = vld [vmem:[%s1166_s1 + $0x38] sm:$0xff]   ;;  %p869_p8 = por %p868_p7, %p867_p5 }
  0x3f   : > { %p863_p4 = pneg %p862_p13 }
  0x40   : > { %377 = vrot.lane.b32.xlu1 %v207_v23, %s929_s4 }
  0x41   : > { %375 = vrot.lane.b32.xlu0 %v206_v16, %s929_s4  ;;  %743 = vmatmul.mubr.msk.bf16.vlgmr.msra.gmra.mxu0 %vm240_vm0, %v826_v25  ;;  %p870_p10 = pnand %p869_p8, %p863_p4 }
  0x42   : > { %751 = vmatmul.mubr.msk.bf16.vlgmr.msra.gmra.mxu1 %vm240_vm0, %v827_v26  ;;  %758 = vmatprep.mubr.msk.bf16.mxu0 %vm240_vm0, %v828_v27 }
  0x43   : > { %766 = vmatprep.mubr.msk.bf16.mxu1 %vm240_vm0, %v830_v30 }
  0x44   : > { %463 = vrot.lane.b32.xlu1 %v211_v28, %s929_s4 }
  0x45   : > { %461 = vrot.lane.b32.xlu0 %v210_v21, %s929_s4 }
  0x48   : > { %543 = vperm.xlu1 %823, %v533_v31  }
  0x49   : > { %538 = vperm.xlu0 %822, %v532_v32  }
  0x4c   : > { %548 = vperm.xlu1 %823, %v534_v33  }
  0x4d   : > { %553 = vperm.xlu0 %822, %v535_v34  }
  0xaa   : > { %v466_v35 = vpop.permute.xlu1 %465 }
  0xab   : > { %v380_v36 = vpop.permute.xlu0 %379 }
  0xae   : > { %v468_v37 = vpop.permute.xlu1 %467 }
  0xaf   : > { %v382_v38 = vpop.permute.xlu0 %381  ;;  %v470_v39 = vsel %vm383_vm1, %v466_v35, %v468_v37 }
  0xb0   : > { %v385_v40 = vsel %vm383_vm1, %v380_v36, %v382_v38  ;;  %762 = vmatprep.subr.bf16.mxu1 %v470_v39 }
  0xb1   : > { %754 = vmatprep.subr.bf16.mxu0 %v385_v40  ;;  %763 = vmatpush3.bf16.msra.mxu1 %v470_v39 }
  0xb2   : > { %755 = vmatpush3.bf16.msra.mxu0 %v385_v40  ;;  %v378_v41 = vpop.permute.xlu1 %377 }
  0xb3   : > { %v376_v42 = vpop.permute.xlu0 %375 }
  0xb4   : > { %v384_v43 = vsel %vm383_vm1, %v376_v42, %v378_v41 }
  0xb5   : > { %756 = vmatprep.subr.bf16.mxu0 %v384_v43 }
  0xb6   : > { %757 = vmatpush3.bf16.msra.mxu0 %v384_v43  ;;  %v464_v45 = vpop.permute.xlu1 %463 }
  0xb7   : > { %v462_v46 = vpop.permute.xlu0 %461 }
  0xb8   : > { %v469_v47 = vsel %vm383_vm1, %v462_v46, %v464_v45 }
  0xb9   : > { %759 = vmatmul.mubr.msk.bf16.vlgmr.msra.gmra.mxu0 %vm240_vm0, %v829_v44  ;;  %764 = vmatprep.subr.bf16.mxu1 %v469_v47 }
  0xba   : > { %765 = vmatpush3.bf16.msra.mxu1 %v469_v47 }
  0xbd   : > { %767 = vmatmul.mubr.msk.bf16.vlgmr.msra.gmra.mxu1 %vm240_vm0, %v831_v48 }
  0xc3   : > { %v544_v56 = vpop.permute.xlu1 %543 }
  0xc4   : > { %v539_v63 = vpop.permute.xlu0 %538 }
  0xc7   : > { %v549_v5 = vpop.permute.xlu1 %548 }
  0xc8   : > { %v554_v15 = vpop.permute.xlu0 %553 }
 0x101   : > { %v744_v49 = vpop.f32.mrf.mxu0 }
 0x102   : > { %v752_v50 = vpop.f32.mrf.mxu1 }
 0x103   : > { %v281_v51 = vpop.f32.mrf.mxu0  ;;  %v355_v58 = vadd.f32 %v752_v50, %v744_v49 }
 0x104   : > { %v346_v52 = vpop.f32.mrf.mxu1 }
 0x105   : > { %v745_v53 = vpop.f32.mrf.mxu0  ;;  %v347_v61 = vadd.f32 %v346_v52, %v281_v51 }
 0x106   : > { %v753_v54 = vpop.f32.mrf.mxu1 }
 0x107   : > { %v284_v55 = vpop.f32.mrf.mxu0  ;;  %v358_v2 = vadd.f32 %v753_v54, %v745_v53 }
 0x108   : > { %v349_v59 = vpop.f32.mrf.mxu1 }
 0x109   : > { %v350_v8 = vadd.f32 %v349_v59, %v284_v55 }
 0x179   : > { %v760_v57 = vpop.f32.mrf.mxu0 }
 0x17a   : > { %v445_v62 = vadd.f32 %v760_v57, %v355_v58 }
 0x17b   : > { %v428_v60 = vpop.f32.mrf.mxu0 }
 0x17c   : > { %v443_v3 = vadd.f32 %v428_v60, %v347_v61 }
 0x17d   : > { %v761_v0 = vpop.f32.mrf.mxu0  ;;  %v768_v1 = vpop.f32.mrf.mxu1 }
 0x17e   : > { %v530_v4 = vadd.f32 %v768_v1, %v445_v62  ;;  %v446_v9 = vadd.f32 %v761_v0, %v358_v2 }
 0x17f   : > { %v431_v6 = vpop.f32.mrf.mxu0  ;;  %v513_v7 = vpop.f32.mrf.mxu1 }
 0x180   : > { %v528_v10 = vadd.f32 %v513_v7, %v443_v3  ;;  %v558_v12 = vadd.f32 %v549_v5, %v530_v4  ;;  %v444_v13 = vadd.f32 %v431_v6, %v350_v8 }
 0x181   : > { %v769_v11 = vpop.f32.mrf.mxu1 }
 0x182   : > { %v531_v14 = vadd.f32 %v769_v11, %v446_v9  ;;  %v556_v17 = vadd.f32 %v539_v63, %v528_v10  ;;  %v562_v20 = vmax.f32 %v558_v12, 0.0 }
 0x183   : > { %v516_v16 = vpop.f32.mrf.mxu1 }
 0x184   : > { %v559_v18 = vadd.f32 %v554_v15, %v531_v14  ;;  %v529_v19 = vadd.f32 %v516_v16, %v444_v13  ;;  %v560_v23 = vmax.f32 %v556_v17, 0.0 }
 0x186   : > { %v563_v21 = vmax.f32 %v559_v18, 0.0  ;;  %v557_v22 = vadd.f32 %v544_v56, %v529_v19 }
 0x188   : > { %v719_v24 = vpack.c.bf16 %v563_v21, %v562_v20  ;;  %v561_v25 = vmax.f32 %v557_v22, 0.0 }
 0x18a   : > { %721 = vst [vmem:[%s188_s26 + $0x8] sm:$0xff] %v719_v24   ;;  %v714_v26 = vpack.c.bf16 %v561_v25, %v560_v23 }
 0x18c   : > { %715 = vst [vmem:[%s188_s26] sm:$0xff] %v714_v26  }
 0x18d   : > { %873 = shalt.err (!%p870_p10)
}
 0x18e   : > { %s874_s7 = scalar_lea.hbm %s1122_s9, 256  ;;  %s878_s17 = scalar_lea.hbm %s1168_s3, 512 }
 0x18f   : > { %p875_p0 = scmp.ne.s32.totalorder %s1122_s9, %s874_s7  ;;  %p879_p1 = scmp.lt.s32.totalorder %s1122_s9, %s1168_s3 }
 0x190   : > { %p880_p3 = scmp.lt.s32.totalorder %s878_s17, %s874_s7 }
 0x191   : > { %p876_p2 = pnand %p875_p0, %p1177_p12 }
 0x192   : > { %p881_p6 = por %p880_p3, %p879_p1 }
 0x193   : > { %p877_p9 = pneg %p876_p2 }
 0x195   : > { %p882_p11 = pnand %p881_p6, %p877_p9 }
 0x197   : > { %885 = shalt.err (!%p882_p11)
}
 0x198   : > { %s932_s22 = smov 64   ;;  %s933_s26 = smov 4  }
 0x199   : > { %772 = dma.vmem_to_hbm [thread:$0]  (%p1177_p12), %s1117_s27, 256, %s1122_s9, %s585_s10, %s932_s22, %s932_s22, %s933_s26  }
 0x19a PF: > { %s613_s28 = sand.u32 1, %s912_s12   ;;  %p1178_p13 = scmp.ne.s32.totalorder %s1174_s25, 0 }
 0x19b   : > { %p1179_p4 = scmp.ge.s32.totalorder %s924_s15, 2  ;;  %s614_s29 = scalar_lea.sflag [#allocation4], %s613_s28 }
 0x19d   : > { %p779_p5 = pnand %p1179_p4, %p1178_p13 }
 0x19f   : > { %p780_p7 = pneg %p779_p5 }
 0x1a1   : > { %907 = dma.done.wait (%p780_p7), %s614_s29, 256  }
 0x1a2   : > { %909 = vsyncadd (%p780_p7), %s614_s29, 4294967040  ;;  %p16_p8 = scmp.ge.s32.totalorder %s979_s18, 4   ;;  %s1180_s12 = smov %s916_s13 }
 0x1a3   : > { %s1181_s13 = smov %s920_s14  ;;  %s1182_s14 = smov %s991_s21 }
 0x1a4   : > { %s1183_s15 = smov %s979_s18  ;;  %18 = sbr.rel (!%p16_p8) target bundleno = 5 (0x5), region = 77 }
 0x1a9   :  { %619 = vsyncpa [#allocation3], 1 }
 0x1aa   :  { %621 = vsyncpa [#allocation3 + $0x1], 1 }
 0x1ab   :  { %622 = vsyncpa [#allocation4], 1 }
 0x1ac   :  { %624 = vsyncpa [#allocation4 + $0x1], 1 }

</bundles_post_ra>
